<compile_context>
chip_gen: v7x
topology: tpu7x:2x2x1
jax: 0.10.0
libtpu: 0.0.40
codegen_flags: <defaults>
</compile_context>

<pallas_src>
import functools

import jax
import jax.numpy as jnp
from jax.experimental import pallas as pl
from jax.experimental.pallas import tpu as pltpu

LANE = 128                     # lane width / minimum padding granule
SMALL_N_XLA_MAX = 1024         # <= this many points: fused XLA, no Pallas
SINGLE_STEP_MAX_ROWS = 2048    # <= this many 128-pt rows: one grid step
ROW_TILE_LARGE = 2048          # rows per grid step for large point clouds
VMEM_LIMIT_BYTES = 32 * 1024 * 1024   # safe on v5e/v6e/v7x physical VMEM


# -------------------------- glue (plain JAX) --------------------------------
def batch_rodrigues(rot_vecs, epsilon=1e-8):
    """Axis-angle (B,3) -> rotation matrices (B,3,3). Matches SMPL/smalify."""
    b = rot_vecs.shape[0]
    angle = jnp.linalg.norm(rot_vecs + epsilon, axis=1, keepdims=True)   # (B,1)
    rot_dir = rot_vecs / angle                                           # (B,3)
    cos = jnp.cos(angle)[:, None, :]                                     # (B,1,1)
    sin = jnp.sin(angle)[:, None, :]                                     # (B,1,1)
    rx, ry, rz = jnp.split(rot_dir, 3, axis=1)
    zeros = jnp.zeros((b, 1), dtype=rot_vecs.dtype)
    K = jnp.concatenate(
        [zeros, -rz, ry, rz, zeros, -rx, -ry, rx, zeros], axis=1
    ).reshape(b, 3, 3)
    ident = jnp.eye(3, dtype=rot_vecs.dtype)[None]
    return ident + sin * K + (1.0 - cos) * jnp.matmul(K, K)


def build_projection(rotation_aa, global_translation, fx, fy, center):
    """3x4 projection matrix P = K @ [R | t] (12 scalars, plain JAX)."""
    R = batch_rodrigues(rotation_aa[None])[0]                       # (3,3)
    t = -(R @ global_translation.T).T                               # (1,3)
    zero = jnp.zeros((), jnp.float32)
    one = jnp.ones((), jnp.float32)
    K = jnp.stack([
        jnp.stack([fx, zero, center[0, 0]]),
        jnp.stack([zero, fy, center[0, 1]]),
        jnp.stack([zero, zero, one]),
    ])                                                              # (3,3)
    extr = jnp.concatenate([R, t.reshape(3, 1)], axis=1)            # (3,4)
    return (K @ extr).astype(jnp.float32)                           # (3,4)


# ------------------------------ Pallas kernel --------------------------------
def _project_kernel(P_ref, pts_ref, out_ref):
    # P_ref  : SMEM (12,)  flattened 3x4 projection matrix (scalars)
    # pts_ref: VMEM (3, row_tile, 128)   sublane-dense x / y / z planes
    # out_ref: VMEM (2, row_tile, 128)   sublane-dense u / v planes
    x = pts_ref[0]
    y = pts_ref[1]
    z = pts_ref[2]
    u = P_ref[0] * x + P_ref[1] * y + P_ref[2] * z + P_ref[3]
    v = P_ref[4] * x + P_ref[5] * y + P_ref[6] * z + P_ref[7]
    w = P_ref[8] * x + P_ref[9] * y + P_ref[10] * z + P_ref[11]
    inv_w = 1.0 / w                      # one exact reciprocal (EUP), reused
    out_ref[0] = u * inv_w
    out_ref[1] = v * inv_w


def _project_pallas(P_flat, pts_3r128, row_tile):
    """pts_3r128: (3, rows, 128) f32  ->  (2, rows, 128) f32."""
    rows = pts_3r128.shape[1]
    n_total = rows * LANE
    cost = pl.CostEstimate(flops=20 * n_total,
                           transcendentals=n_total,
                           bytes_accessed=(3 + 2) * 4 * n_total)
    return pl.pallas_call(
        _project_kernel,
        out_shape=jax.ShapeDtypeStruct((2, rows, LANE), jnp.float32),
        grid_spec=pltpu.PrefetchScalarGridSpec(
            num_scalar_prefetch=0,
            grid=(pl.cdiv(rows, row_tile),),
            in_specs=[
                pl.BlockSpec(memory_space=pltpu.MemorySpace.SMEM),    # P (12,)
                pl.BlockSpec((3, row_tile, LANE), lambda i: (0, i, 0)),
            ],
            out_specs=pl.BlockSpec((2, row_tile, LANE), lambda i: (0, i, 0)),
        ),
        compiler_params=pltpu.CompilerParams(
            dimension_semantics=("parallel",),
            vmem_limit_bytes=VMEM_LIMIT_BYTES,
        ),
        cost_estimate=cost,
    )(P_flat, pts_3r128)


# --------------------------- small-N fused XLA path --------------------------
def _project_xla(P, pts_n3):
    uvw = pts_n3 @ P[:, :3].T + P[:, 3][None, :]                    # (N,3)
    return uvw[:, :2] / uvw[:, 2:3]                                 # (N,2)


# ------------------------------ module wrapper --------------------------------
@functools.partial(jax.jit, static_argnames=("row_tile", "force_pallas"))
def perspective_camera_forward(points, rotation_aa, global_translation,
                               focal_length_x, focal_length_y, center,
                               row_tile=None, force_pallas=False):
    """points: (1, N, 3) float32  ->  (1, N, 2) float32 (PyTorch semantics)."""
    P = build_projection(rotation_aa, global_translation,
                         focal_length_x[0], focal_length_y[0], center)

    pts_n3 = points[0].astype(jnp.float32)                          # (N, 3)
    n = pts_n3.shape[0]

    # Small point clouds: a single fused XLA matmul+divide beats the kernel
    # (dispatch + layout overhead would dominate).
    if (not force_pallas) and (row_tile is None) and n <= SMALL_N_XLA_MAX:
        return _project_xla(P, pts_n3)[None]

    # Static (trace-time) tiling decision.
    rows_lane = (n + LANE - 1) // LANE
    if row_tile is not None:
        tile = int(row_tile)
        n_pad = ((n + tile * LANE - 1) // (tile * LANE)) * (tile * LANE)
    elif rows_lane <= SINGLE_STEP_MAX_ROWS:
        tile = rows_lane                              # one grid step, no pipe
        n_pad = rows_lane * LANE
    else:
        tile = ROW_TILE_LARGE                         # ~262k pts / step
        n_pad = ((n + tile * LANE - 1) // (tile * LANE)) * (tile * LANE)

    # TODO(synk): if the AoS->SoA transpose / pad ever dominate at very large
    # N, keep the point cloud in SoA (3, rows, 128) upstream and feed it to
    # _project_pallas directly (the kernel itself only moves 20 B/point).
    pts = jnp.transpose(pts_n3, (1, 0))                             # (3, N)
    if n_pad != n:
        pad = n_pad - n
        # Pad (x, y, z) = (0, 0, 1): w in the pad region stays well-behaved
        # for any reasonable camera; pad lanes are sliced away regardless.
        pad_cols = jnp.concatenate(
            [jnp.zeros((2, pad), jnp.float32), jnp.ones((1, pad), jnp.float32)],
            axis=0)
        pts = jnp.concatenate([pts, pad_cols], axis=1)              # (3, n_pad)

    pts_3r128 = pts.reshape(3, n_pad // LANE, LANE)                 # free view
    out = _project_pallas(P.reshape(12), pts_3r128, tile)           # (2,rows,128)
    out_2n = out.reshape(2, n_pad)[:, :n]                           # (2, N)
    return jnp.transpose(out_2n, (1, 0))[None]                      # (1, N, 2)


# ------------------------------ reference ------------------------------------
def perspective_camera_ref(points, rotation_aa, global_translation,
                           focal_length_x, focal_length_y, center):
    P = build_projection(rotation_aa, global_translation,
                         focal_length_x[0], focal_length_y[0], center)
    n = points.shape[1]
    hom = jnp.concatenate([points[0].astype(jnp.float32),
                           jnp.ones((n, 1), jnp.float32)], axis=1)
    p2d = (P @ hom.T).T
    return (p2d[:, :2] / p2d[:, 2:3])[None]


if __name__ == "__main__":
    batch_size = 1

    # Deterministic "parameter" / buffer initialization (nn.Module __init__).
    rotation_aa = jnp.array([0.10, -0.20, 0.30], jnp.float32)            # (3,)
    global_translation = jnp.array([[0.05, -0.02, 0.10]], jnp.float32)   # (1,3)
    focal_length_x = jnp.full([batch_size], 5000.0, jnp.float32)
    focal_length_y = jnp.full([batch_size], 5000.0, jnp.float32)
    center = jnp.zeros([batch_size, 2], jnp.float32)

    def make_points(key, n):
        kx, kz = jax.random.split(key)
        xy = jax.random.normal(kx, (1, n, 2), jnp.float32)
        z = 2.0 + jax.random.uniform(kz, (1, n, 1), jnp.float32) * 2.0
        return jnp.concatenate([xy, z], axis=-1)                     # (1,n,3)

    def check(out, points, what):
        ref = perspective_camera_ref(points, rotation_aa, global_translation,
                                     focal_length_x, focal_length_y, center)
        assert out.shape == ref.shape, (what, out.shape, ref.shape)
        err = float(jnp.max(jnp.abs(out - ref)))
        assert jnp.allclose(out, ref, rtol=1e-4, atol=1e-3), (what, err)

    args = (rotation_aa, global_translation, focal_length_x, focal_length_y,
            center)

    # 1) Pallas kernel, small N forced through the kernel (single grid step).
    pts_a = make_points(jax.random.PRNGKey(0), 256)
    out_a = jax.block_until_ready(
        perspective_camera_forward(pts_a, *args, force_pallas=True))
    check(out_a, pts_a, "pallas-small")

    # 2) Default small-N path (fused XLA, no Pallas).
    out_b = jax.block_until_ready(perspective_camera_forward(pts_a, *args))
    check(out_b, pts_a, "xla-small")

    # 3) Pallas default path at N > SMALL_N_XLA_MAX (single-step, padded to
    #    a lane multiple: 5000 -> 5120).
    pts_c = make_points(jax.random.PRNGKey(1), 5000)
    out_c = jax.block_until_ready(perspective_camera_forward(pts_c, *args))
    check(out_c, pts_c, "pallas-single-step")

    # 4) Pallas multi-step tiled path (row_tile override -> 3 parallel grid
    #    steps), exercising the large-N code path at small cost.
    out_d = jax.block_until_ready(
        perspective_camera_forward(pts_c, *args, row_tile=16,
                                   force_pallas=True))
    check(out_d, pts_c, "pallas-tiled")

    print("KERNEL_OK")
</pallas_src>

<mosaic_0001>
module attributes {stable_mosaic.version = 11 : i64} {
  func.func @_project_kernel(%arg0: i32, %arg1: memref<12xf32, #tpu.memory_space<smem>>, %arg2: memref<3x2x128xf32, #tpu.memory_space<vmem>>, %arg3: memref<2x2x128xf32, #tpu.memory_space<vmem>>) attributes {dimension_semantics = [#tpu.dimension_semantics<parallel>], iteration_bounds = array<i64: 1>, scalar_prefetch = 0 : i64, scratch_operands = 0 : i64, tpu.core_type = #tpu.core_type<tc>, window_params = [{transform_indices = @transform_0, window_bounds = array<i64: 12>}, {transform_indices = @transform_1, window_bounds = array<i64: 3, 2, 128>}, {transform_indices = @transform_2, window_bounds = array<i64: 2, 2, 128>}]} {
    %c0 = arith.constant 0 : index
    %c0_0 = arith.constant 0 : index
    %c0_1 = arith.constant 0 : index
    %0 = vector.load %arg2[%c0, %c0_0, %c0_1] : memref<3x2x128xf32, #tpu.memory_space<vmem>>, vector<1x2x128xf32>
    %1 = vector.shape_cast %0 : vector<1x2x128xf32> to vector<2x128xf32>
    %c1 = arith.constant 1 : index
    %c0_2 = arith.constant 0 : index
    %c0_3 = arith.constant 0 : index
    %2 = vector.load %arg2[%c1, %c0_2, %c0_3] : memref<3x2x128xf32, #tpu.memory_space<vmem>>, vector<1x2x128xf32>
    %3 = vector.shape_cast %2 : vector<1x2x128xf32> to vector<2x128xf32>
    %c2 = arith.constant 2 : index
    %c0_4 = arith.constant 0 : index
    %c0_5 = arith.constant 0 : index
    %4 = vector.load %arg2[%c2, %c0_4, %c0_5] : memref<3x2x128xf32, #tpu.memory_space<vmem>>, vector<1x2x128xf32>
    %5 = vector.shape_cast %4 : vector<1x2x128xf32> to vector<2x128xf32>
    %c0_6 = arith.constant 0 : index
    %6 = memref.load %arg1[%c0_6] : memref<12xf32, #tpu.memory_space<smem>>
    %7 = vector.broadcast %6 : f32 to vector<2x128xf32>
    %8 = arith.mulf %7, %1 : vector<2x128xf32>
    %c1_7 = arith.constant 1 : index
    %9 = memref.load %arg1[%c1_7] : memref<12xf32, #tpu.memory_space<smem>>
    %10 = vector.broadcast %9 : f32 to vector<2x128xf32>
    %11 = arith.mulf %10, %3 : vector<2x128xf32>
    %12 = arith.addf %8, %11 : vector<2x128xf32>
    %c2_8 = arith.constant 2 : index
    %13 = memref.load %arg1[%c2_8] : memref<12xf32, #tpu.memory_space<smem>>
    %14 = vector.broadcast %13 : f32 to vector<2x128xf32>
    %15 = arith.mulf %14, %5 : vector<2x128xf32>
    %16 = arith.addf %12, %15 : vector<2x128xf32>
    %c3 = arith.constant 3 : index
    %17 = memref.load %arg1[%c3] : memref<12xf32, #tpu.memory_space<smem>>
    %18 = vector.broadcast %17 : f32 to vector<2x128xf32>
    %19 = arith.addf %16, %18 : vector<2x128xf32>
    %c4 = arith.constant 4 : index
    %20 = memref.load %arg1[%c4] : memref<12xf32, #tpu.memory_space<smem>>
    %21 = vector.broadcast %20 : f32 to vector<2x128xf32>
    %22 = arith.mulf %21, %1 : vector<2x128xf32>
    %c5 = arith.constant 5 : index
    %23 = memref.load %arg1[%c5] : memref<12xf32, #tpu.memory_space<smem>>
    %24 = vector.broadcast %23 : f32 to vector<2x128xf32>
    %25 = arith.mulf %24, %3 : vector<2x128xf32>
    %26 = arith.addf %22, %25 : vector<2x128xf32>
    %c6 = arith.constant 6 : index
    %27 = memref.load %arg1[%c6] : memref<12xf32, #tpu.memory_space<smem>>
    %28 = vector.broadcast %27 : f32 to vector<2x128xf32>
    %29 = arith.mulf %28, %5 : vector<2x128xf32>
    %30 = arith.addf %26, %29 : vector<2x128xf32>
    %c7 = arith.constant 7 : index
    %31 = memref.load %arg1[%c7] : memref<12xf32, #tpu.memory_space<smem>>
    %32 = vector.broadcast %31 : f32 to vector<2x128xf32>
    %33 = arith.addf %30, %32 : vector<2x128xf32>
    %c8 = arith.constant 8 : index
    %34 = memref.load %arg1[%c8] : memref<12xf32, #tpu.memory_space<smem>>
    %35 = vector.broadcast %34 : f32 to vector<2x128xf32>
    %36 = arith.mulf %35, %1 : vector<2x128xf32>
    %c9 = arith.constant 9 : index
    %37 = memref.load %arg1[%c9] : memref<12xf32, #tpu.memory_space<smem>>
    %38 = vector.broadcast %37 : f32 to vector<2x128xf32>
    %39 = arith.mulf %38, %3 : vector<2x128xf32>
    %40 = arith.addf %36, %39 : vector<2x128xf32>
    %c10 = arith.constant 10 : index
    %41 = memref.load %arg1[%c10] : memref<12xf32, #tpu.memory_space<smem>>
    %42 = vector.broadcast %41 : f32 to vector<2x128xf32>
    %43 = arith.mulf %42, %5 : vector<2x128xf32>
    %44 = arith.addf %40, %43 : vector<2x128xf32>
    %c11 = arith.constant 11 : index
    %45 = memref.load %arg1[%c11] : memref<12xf32, #tpu.memory_space<smem>>
    %46 = vector.broadcast %45 : f32 to vector<2x128xf32>
    %47 = arith.addf %44, %46 : vector<2x128xf32>
    %cst = arith.constant 1.000000e+00 : f32
    %48 = vector.broadcast %cst : f32 to vector<2x128xf32>
    %49 = arith.divf %48, %47 : vector<2x128xf32>
    %50 = arith.mulf %19, %49 : vector<2x128xf32>
    %c0_9 = arith.constant 0 : index
    %c0_10 = arith.constant 0 : index
    %c0_11 = arith.constant 0 : index
    %51 = vector.load %arg3[%c0_9, %c0_10, %c0_11] : memref<2x2x128xf32, #tpu.memory_space<vmem>>, vector<1x2x128xf32>
    %52 = vector.shape_cast %51 : vector<1x2x128xf32> to vector<2x128xf32>
    %53 = vector.shape_cast %50 : vector<2x128xf32> to vector<1x2x128xf32>
    tpu.vector_store %arg3[%c0_9, %c0_10, %c0_11], %53 {strides = array<i32>} : memref<2x2x128xf32, #tpu.memory_space<vmem>>, vector<1x2x128xf32>,
    %54 = arith.mulf %33, %49 : vector<2x128xf32>
    %c1_12 = arith.constant 1 : index
    %c0_13 = arith.constant 0 : index
    %c0_14 = arith.constant 0 : index
    %55 = vector.load %arg3[%c1_12, %c0_13, %c0_14] : memref<2x2x128xf32, #tpu.memory_space<vmem>>, vector<1x2x128xf32>
    %56 = vector.shape_cast %55 : vector<1x2x128xf32> to vector<2x128xf32>
    %57 = vector.shape_cast %54 : vector<2x128xf32> to vector<1x2x128xf32>
    tpu.vector_store %arg3[%c1_12, %c0_13, %c0_14], %57 {strides = array<i32>} : memref<2x2x128xf32, #tpu.memory_space<vmem>>, vector<1x2x128xf32>,
    return
  }
  func.func @transform_0(%arg0: i32) -> i32 {
    %c0_i32 = arith.constant 0 : i32
    %c0_i32_0 = arith.constant 0 : i32
    return %c0_i32 : i32
  }
  func.func @transform_1(%arg0: i32) -> (i32, i32, i32) {
    %c0_i32 = arith.constant 0 : i32
    %c0_i32_0 = arith.constant 0 : i32
    %c0_i32_1 = arith.constant 0 : i32
    return %c0_i32, %arg0, %c0_i32_0 : i32, i32, i32
  }
  func.func @transform_2(%arg0: i32) -> (i32, i32, i32) {
    %c0_i32 = arith.constant 0 : i32
    %c0_i32_0 = arith.constant 0 : i32
    %c0_i32_1 = arith.constant 0 : i32
    return %c0_i32, %arg0, %c0_i32_0 : i32, i32, i32
  }
}

</mosaic_0001>

<bundles_post_ra>
// kernel: perspective_camera_forward.1
= control target key start
LH: loop header
LB: loop body
LE: loop exit
PB: predicated region body
PF: predicated region fallthrough
CT: control target
= control target key end

     0   :  { %7 = vsyncpa [#allocation3], 0  ;;  %s148_s0 = inlined_call_operand.vmem [shape: f32[12], index: 0, kind: input, shape index: {}]   ;;  %s149_s1 = inlined_call_operand.vmem [shape: f32[3,2,128], index: 1, kind: input, shape index: {}]   ;;  %s150_s2 = inlined_call_operand.vmem [shape: f32[2,2,128], index: 2, kind: output, shape index: {}]  }
   0x1   :  { %s14_s11 = sshll.u32 %s148_s0, 4  ;;  %s15_s11 = int_to_ptr.vmem [resolvable:$true] %s14_s11 }
   0x2   :  { %s100_s12 = scalar_lea.vmem %s15_s11, 16  ;;  %p105_p1 = scmp.lt.s32.totalorder %s15_s11, %s15_s11 }
   0x3   :  { %p101_p0 = scmp.ne.s32.totalorder %s15_s11, %s100_s12  ;;  %p106_p2 = scmp.lt.s32.totalorder %s100_s12, %s100_s12 }
   0x5   :  { %p107_p3 = por %p106_p2, %p105_p1 }
   0x7   :  { %p108_p4 = pnand %p107_p3, %p101_p0 }
   0x9   :  { %111 = shalt.err (!%p108_p4)
}
   0xa   :  { %s114_s13 = smov [#allocation2]  }
   0xb   :  { %17 = dma.vmem_to_smem %s15_s11, 16, %s114_s13, [#allocation3]  }
   0xc   :  { %112 = dma.done.wait [#allocation3], 16  }
   0xd   :  { %113 = vsyncadd [#allocation3], 4294967280 }
   0xe   :  { %23 = sfence }
   0xf   :  { %s29_s14 = sld [smem:[#allocation2]]  ;;  %s85_s15 = sld [smem:[#allocation2 + $0x1]]  ;;  %v24_v0 = vld [vmem:[%s149_s1] sm:$0x3]  ;;  %v83_v1 = vld [vmem:[%s149_s1 + $0x2] sm:$0x3] }
  0x10   :  { %s92_s16 = sld [smem:[#allocation2 + $0x8]]  ;;  %s93_s17 = sld [smem:[#allocation2 + $0x9]]  ;;  %v84_v2 = vld [vmem:[%s149_s1 + $0x4] sm:$0x3] }
  0x11   :  { %s94_s18 = sld [smem:[#allocation2 + $0xa]]  ;;  %s95_s19 = sld [smem:[#allocation2 + $0xb]] }
  0x12   :  { %s88_s0 = sld [smem:[#allocation2 + $0x4]]  ;;  %s89_s20 = sld [smem:[#allocation2 + $0x5]] }
  0x13   :  { %s86_s21 = sld [smem:[#allocation2 + $0x2]]  ;;  %s90_s22 = sld [smem:[#allocation2 + $0x6]] }
  0x14   :  { %s87_s29 = sld [smem:[#allocation2 + $0x3]]  ;;  %s91_s1 = sld [smem:[#allocation2 + $0x7]] }
  0x15   :  { %v30_v3 = vstv %s29_s14  ;;  %v33_v6 = vstv %s85_s15 }
  0x16   :  { %v58_v4 = vstv %s92_s16  ;;  %v61_v5 = vstv %s93_s17  ;;  %v31_v13 = vmul.f32 %v30_v3, %v24_v0  ;;  %v34_v15 = vmul.f32 %v83_v1, %v33_v6 }
  0x17   :  { %v59_v7 = vmul.f32 %v58_v4, %v24_v0  ;;  %v62_v8 = vmul.f32 %v83_v1, %v61_v5  ;;  %v65_v9 = vstv %s94_s18  ;;  %v69_v16 = vstv %s95_s19 }
  0x18   :  { %v66_v10 = vmul.f32 %v84_v2, %v65_v9  ;;  %v44_v11 = vstv %s88_s0  ;;  %v47_v12 = vstv %s89_s20  ;;  %v35_v23 = vadd.f32 %v34_v15, %v31_v13 }
  0x19   :  { %v63_v14 = vadd.f32 %v62_v8, %v59_v7  ;;  %v45_v17 = vmul.f32 %v44_v11, %v24_v0  ;;  %v48_v18 = vmul.f32 %v83_v1, %v47_v12  ;;  %v37_v19 = vstv %s86_s21 }
  0x1a   :  { %v51_v21 = vstv %s90_s22  ;;  %v38_v24 = vmul.f32 %v84_v2, %v37_v19  ;;  %v41_v29 = vstv %s87_s29  ;;  %v55_v30 = vstv %s91_s1 }
  0x1b   :  { %v67_v20 = vadd.f32 %v66_v10, %v63_v14  ;;  %v49_v25 = vadd.f32 %v48_v18, %v45_v17  ;;  %v52_v26 = vmul.f32 %v84_v2, %v51_v21 }
  0x1c   :  { %v39_v27 = vadd.f32 %v38_v24, %v35_v23 }
  0x1d   :  { %v70_v22 = vadd.f32 %v69_v16, %v67_v20  ;;  %v53_v28 = vadd.f32 %v52_v26, %v49_v25 }
  0x1e   :  { %v42_v31 = vadd.f32 %v41_v29, %v39_v27 }
  0x1f   :  { %98 = vrcp.f32 %v70_v22  ;;  %v56_v32 = vadd.f32 %v55_v30, %v53_v28 }
  0x29   :  { %v99_v33 = vpop.eup %98 }
  0x2a   :  { %v73_v34 = vmul.f32 %v99_v33, %v42_v31  ;;  %v75_v35 = vmul.f32 %v99_v33, %v56_v32 }
  0x2c   :  { %74 = vst [vmem:[%s150_s2] sm:$0x3] %v73_v34  ;;  %96 = vst [vmem:[%s150_s2 + $0x2] sm:$0x3] %v75_v35 }
  0x2d   :  { %82 = vsyncpa [#allocation3], 1 }

</bundles_post_ra>
